<compile_context>
chip_gen: v5e
topology: v5e:2x2
jax: 0.10.0
libtpu: 0.0.40
codegen_flags: <defaults>
</compile_context>

<pallas_src>
import jax
import jax.numpy as jnp
from jax import lax
from jax.experimental import pallas as pl
from jax.experimental.pallas import tpu as pltpu


def _round_up(x, m):
    return -(-x // m) * m


def _self_attention_kernel(h_ref, w1_ref, w2p_ref, o_ref):
    # h_ref:   (block_b, L, D)   HBM dtype of h (usually f32)
    # w1_ref:  (da, D)           compute dtype (f32 or bf16), PyTorch (out, in)
    # w2p_ref: (r_pad, da)       f32, rows [r:] are zero padding
    # o_ref:   (block_b, r, L)
    bb, L, D = h_ref.shape
    r_pad, da = w2p_ref.shape
    r = o_ref.shape[1]

    compute_dtype = w1_ref.dtype
    # f32 path: HIGHEST precision = full MXU decomposition (PyTorch f32 parity;
    # hidden behind the h DMA since the kernel is memory-bound).
    # bf16 path: single-pass bf16 MXU with f32 accumulation.
    prec1 = (lax.Precision.HIGHEST if compute_dtype == jnp.float32
             else lax.Precision.DEFAULT)

    # Fold the batch block into the matmul M dimension (leading-dim collapse;
    # L % 8 == 0 is guaranteed by the wrapper so this is layout-free).
    # The cast to the compute dtype happens HERE, after the DMA, so the bf16
    # path does not pay an extra HBM round trip in the wrapper.
    h_flat = h_ref[...].reshape(bb * L, D).astype(compute_dtype)     # (bb*L, D)

    hidden = jnp.tanh(
        lax.dot_general(
            h_flat, w1_ref[...],
            dimension_numbers=(((1,), (1,)), ((), ())),               # h @ W1^T
            preferred_element_type=jnp.float32,
            precision=prec1,
        )
    )                                                                 # (bb*L, da) f32

    scores = lax.dot_general(
        hidden, w2p_ref[...],
        dimension_numbers=(((1,), (1,)), ((), ())),                   # hidden @ W2p^T
        preferred_element_type=jnp.float32,
        precision=lax.Precision.HIGHEST,                              # tiny matmul
    )                                                                 # (bb*L, r_pad)
    scores = scores.reshape(bb, L, r_pad)                             # (bb, L, r_pad)

    # Batched softmax over the sequence axis (PyTorch dim=1), vectorized over
    # the whole batch block (no per-batch Python loop -> vreg pressure does not
    # scale with block_b).
    m = jnp.max(scores, axis=1, keepdims=True)                        # (bb, 1, r_pad)
    e = jnp.exp(scores - m)                                           # (bb, L, r_pad)
    denom = jnp.sum(e, axis=1, keepdims=True)                         # (bb, 1, r_pad)
    attn = e * pl.reciprocal(denom, approx=True)                      # EUP, not VALU div

    attn_t = jnp.transpose(attn, (0, 2, 1))                           # (bb, r_pad, L)
    o_ref[...] = attn_t[:, :r, :].astype(o_ref.dtype)                 # lane-dense on L


def _vmem_limit_bytes():
    # Generation-aware scoped-VMEM limit: ~50 MiB on v7x (64 MiB physical per
    # TC), ~100 MiB on v5e/v6e (128 MiB physical).  Conservative fallback if
    # the query is unavailable.
    try:
        cap = int(pltpu.get_tpu_info().vmem_capacity_bytes)
    except Exception:
        cap = 64 * 1024 * 1024
    return int(cap * 0.78)


def _estimate_vmem(bb, L, D, da, r, r_pad, h_itemsize, w_itemsize, out_itemsize):
    # Account for everything, not just h: BlockSpec double-buffers every
    # operand (weights too, since we keep the default 2-deep pipeline), plus
    # the f32 intermediates the kernel body materializes.
    lane = 128
    D_p = _round_up(D, lane)
    da_p = _round_up(da, lane)
    L_lanep = _round_up(L, lane)
    L_sub = _round_up(L, 8)

    h_bufs = 2 * bb * L_sub * D_p * h_itemsize
    w1_bufs = 2 * _round_up(da, 8) * D_p * w_itemsize
    w2_bufs = 2 * r_pad * da_p * 4
    out_bufs = 2 * bb * _round_up(r, 8) * L_lanep * out_itemsize
    # hidden (+ tanh temp) at f32, plus scores/exp/attn/attn^T (r_pad lane-pads
    # to 128 inside the kernel).
    intermediates = bb * L_sub * (2 * da_p + 4 * lane) * 4
    return h_bufs + w1_bufs + w2_bufs + out_bufs + intermediates


def _choose_block_b(B, L, D, da, r, r_pad,
                    h_itemsize, w_itemsize, out_itemsize,
                    vmem_limit, min_steps=4):
    budget = int(0.85 * vmem_limit)
    # Keep at least min(min_steps, B) grid steps: the 2-deep BlockSpec pipeline
    # needs >= 2 steps to hide the h DMA at all, and ~4+ (even) steps keep both
    # v7x TensorCores busy with balanced load.
    steps_target = max(1, min(min_steps, B))
    cap = -(-B // steps_target)          # ceil(B / steps_target)
    best = 1
    for cand in range(1, cap + 1):
        if _estimate_vmem(cand, L, D, da, r, r_pad,
                          h_itemsize, w_itemsize, out_itemsize) <= budget:
            best = cand
    return best


def self_attention(h, w1, w2, *, block_b=None, compute_dtype=None):
    """
    h  : (B, L, D)   activations from the BERT encoder
    w1 : (da, D)     PyTorch-layout weight of ws1 (out_features, in_features)
    w2 : (r, da)     PyTorch-layout weight of ws2
    compute_dtype: optional dtype (e.g. jnp.bfloat16) used for the first MXU
                   dot; h is cast *inside* the kernel (no extra HBM traffic).
                   Accumulation, tanh, and the softmax path stay float32.
    returns: (B, r, L), dtype of h
    """
    B, L, D = h.shape
    da, D_w = w1.shape
    r, da_w = w2.shape
    assert D_w == D and da_w == da
    assert L % 8 == 0, "sequence length must be a multiple of 8 (sublane tiling)"
    assert D % 128 == 0, "hidden dim must be a multiple of 128 (lane tiling)"

    out_dtype = h.dtype
    # NOTE: do NOT cast h here -- that would be a separate XLA op adding a full
    # HBM read+write before the kernel even runs.  Only the tiny W1 is cast.
    if compute_dtype is not None:
        w1 = w1.astype(compute_dtype)
    w2 = w2.astype(jnp.float32)  # tiny; second matmul + softmax stay f32

    # Zero-pad the small projection to a sublane multiple so the in-kernel
    # (L, r_pad) -> (r_pad, L) transpose works on clean (8,128) tiles.
    r_pad = _round_up(r, 8)
    if r_pad != r:
        w2p = jnp.zeros((r_pad, da), jnp.float32).at[:r, :].set(w2)
    else:
        w2p = w2

    vmem_limit = _vmem_limit_bytes()
    if block_b is None:
        block_b = _choose_block_b(
            B, L, D, da, r, r_pad,
            jnp.dtype(h.dtype).itemsize,
            jnp.dtype(w1.dtype).itemsize,
            jnp.dtype(out_dtype).itemsize,
            vmem_limit,
        )

    # B need not divide block_b: pad the batch to a whole number of grid steps
    # (zero batches produce uniform attention rows that are sliced away).
    steps = pl.cdiv(B, block_b)
    B_pad = steps * block_b
    h_in = h if B_pad == B else jnp.pad(h, ((0, B_pad - B), (0, 0), (0, 0)))

    out = pl.pallas_call(
        _self_attention_kernel,
        out_shape=jax.ShapeDtypeStruct((B_pad, r, L), out_dtype),
        grid_spec=pltpu.PrefetchScalarGridSpec(
            num_scalar_prefetch=0,
            grid=(steps,),
            in_specs=[
                pl.BlockSpec((block_b, L, D), lambda b: (b, 0, 0)),
                # Constant index_map: weights stay VMEM-resident across the grid.
                pl.BlockSpec((da, D), lambda b: (0, 0)),
                pl.BlockSpec((r_pad, da), lambda b: (0, 0)),
            ],
            out_specs=pl.BlockSpec((block_b, r, L), lambda b: (b, 0, 0)),
        ),
        compiler_params=pltpu.CompilerParams(
            dimension_semantics=("parallel",),   # v7x TCs split the batch axis
            vmem_limit_bytes=vmem_limit,
        ),
    )(h_in, w1, w2p)

    return out if B_pad == B else out[:B]


def _reference(h, w1, w2):
    # Plain-JAX reference mirroring the PyTorch SelfAttention module.
    hidden = jnp.tanh(jnp.einsum("bld,ad->bla", h, w1, precision="highest"))
    scores = jnp.einsum("bla,ra->blr", hidden, w2, precision="highest")
    attn = jax.nn.softmax(scores, axis=1)          # softmax over seq (PyTorch dim=1)
    return jnp.transpose(attn, (0, 2, 1))          # (B, r, L)


if __name__ == "__main__":
    # Small shapes consistent with the module (hidden_dim-like D, da, r=4),
    # sized so the grid has multiple steps (pipelining / megacore exercised).
    B, L, input_dim, da, r = 8, 16, 128, 32, 4

    key = jax.random.PRNGKey(0)
    k_h, k_w1, k_w2 = jax.random.split(key, 3)

    h = jax.random.normal(k_h, (B, L, input_dim), dtype=jnp.float32)
    # PyTorch-layout Linear weights (out_features, in_features)
    w1 = jax.random.normal(k_w1, (da, input_dim), dtype=jnp.float32) * 0.1
    w2 = jax.random.normal(k_w2, (r, da), dtype=jnp.float32) * 0.1

    # f32 path (HIGHEST-precision MXU): only the approximate EUP reciprocal
    # (~2^-12 relative) separates kernel from reference.
    out = jax.block_until_ready(self_attention(h, w1, w2))
    ref = _reference(h, w1, w2)
    assert out.shape == (B, r, L)
    assert jnp.allclose(out, ref, atol=1e-3, rtol=1e-3), "f32 mismatch vs reference"

    # bf16 compute path: h stays f32 in HBM and is cast in-kernel; compare
    # against the reference evaluated on bf16-rounded h/W1 (softmax stays f32).
    out_bf = jax.block_until_ready(
        self_attention(h, w1, w2, compute_dtype=jnp.bfloat16)
    )
    h_r = h.astype(jnp.bfloat16).astype(jnp.float32)
    w1_r = w1.astype(jnp.bfloat16).astype(jnp.float32)
    ref_bf = _reference(h_r, w1_r, w2)
    assert out_bf.shape == (B, r, L)
    assert jnp.allclose(out_bf, ref_bf, atol=5e-3, rtol=5e-3), "bf16 mismatch vs reference"

    # Batch not divisible by block_b: exercises the pad-and-slice path.
    B2 = 5
    h2 = jax.random.normal(key, (B2, L, input_dim), dtype=jnp.float32)
    out2 = jax.block_until_ready(self_attention(h2, w1, w2))
    ref2 = _reference(h2, w1, w2)
    assert out2.shape == (B2, r, L)
    assert jnp.allclose(out2, ref2, atol=1e-3, rtol=1e-3), "odd-batch mismatch vs reference"

    print("KERNEL_OK")
</pallas_src>

<mosaic_0001>
module attributes {stable_mosaic.version = 11 : i64} {
  func.func @_self_attention_kernel(%arg0: i32, %arg1: memref<2x16x128xf32, #tpu.memory_space<vmem>>, %arg2: memref<32x128xf32, #tpu.memory_space<vmem>>, %arg3: memref<8x32xf32, #tpu.memory_space<vmem>>, %arg4: memref<2x4x16xf32, #tpu.memory_space<vmem>>) attributes {dimension_semantics = [#tpu.dimension_semantics<parallel>], iteration_bounds = array<i64: 4>, scalar_prefetch = 0 : i64, scratch_operands = 0 : i64, tpu.core_type = #tpu.core_type<tc>, window_params = [{transform_indices = @transform_0, window_bounds = array<i64: 2, 16, 128>}, {pipeline_mode = #tpu.pipeline_mode<synchronous>, transform_indices = @transform_1, window_bounds = array<i64: 32, 128>}, {pipeline_mode = #tpu.pipeline_mode<synchronous>, transform_indices = @transform_2, window_bounds = array<i64: 8, 32>}, {transform_indices = @transform_3, window_bounds = array<i64: 2, 4, 16>}]} {
    %c0 = arith.constant 0 : index
    %c0_0 = arith.constant 0 : index
    %c0_1 = arith.constant 0 : index
    %0 = vector.load %arg1[%c0, %c0_0, %c0_1] : memref<2x16x128xf32, #tpu.memory_space<vmem>>, vector<2x16x128xf32>
    %1 = vector.shape_cast %0 : vector<2x16x128xf32> to vector<32x128xf32>
    %c0_2 = arith.constant 0 : index
    %c0_3 = arith.constant 0 : index
    %2 = vector.load %arg2[%c0_2, %c0_3] : memref<32x128xf32, #tpu.memory_space<vmem>>, vector<32x128xf32>
    %cst = arith.constant dense<0.000000e+00> : vector<32x32xf32>
    %3 = tpu.matmul %1, %2, %cst {dimension_numbers = #tpu.dot_dimension_numbers<[1], [1], [0], [0], [0, 0, 1, 0], [], []>, precision = #tpu.contract_precision<fp32>} : vector<32x128xf32>, vector<32x128xf32>, vector<32x32xf32> -> vector<32x32xf32>
    %4 = math.tanh %3 : vector<32x32xf32>
    %c0_4 = arith.constant 0 : index
    %c0_5 = arith.constant 0 : index
    %5 = vector.load %arg3[%c0_4, %c0_5] : memref<8x32xf32, #tpu.memory_space<vmem>>, vector<8x32xf32>
    %cst_6 = arith.constant dense<0.000000e+00> : vector<32x8xf32>
    %6 = tpu.matmul %4, %5, %cst_6 {dimension_numbers = #tpu.dot_dimension_numbers<[1], [1], [0], [0], [0, 0, 1, 0], [], []>, precision = #tpu.contract_precision<fp32>} : vector<32x32xf32>, vector<8x32xf32>, vector<32x8xf32> -> vector<32x8xf32>
    %7 = vector.shape_cast %6 : vector<32x8xf32> to vector<2x16x8xf32>
    %cst_7 = arith.constant dense<0xFF800000> : vector<2x8xf32>
    %8 = vector.multi_reduction <maximumf>, %7, %cst_7 [1] : vector<2x16x8xf32> to vector<2x8xf32>
    %9 = vector.shape_cast %8 : vector<2x8xf32> to vector<2x1x8xf32>
    %10 = vector.broadcast %9 : vector<2x1x8xf32> to vector<2x16x8xf32>
    %11 = arith.subf %7, %10 : vector<2x16x8xf32>
    %12 = math.exp %11 : vector<2x16x8xf32>
    %cst_8 = arith.constant dense<0.000000e+00> : vector<2x8xf32>
    %13 = vector.multi_reduction <add>, %12, %cst_8 [1] : vector<2x16x8xf32> to vector<2x8xf32>
    %14 = vector.shape_cast %13 : vector<2x8xf32> to vector<2x1x8xf32>
    %15 = tpu.reciprocal %14 {approx = true} : vector<2x1x8xf32> -> vector<2x1x8xf32>
    %16 = vector.broadcast %15 : vector<2x1x8xf32> to vector<2x16x8xf32>
    %17 = arith.mulf %12, %16 : vector<2x16x8xf32>
    %18 = tpu.transpose %17, [0, 2, 1] : vector<2x16x8xf32> -> vector<2x8x16xf32>
    %19 = vector.extract_strided_slice %18 {offsets = [0, 0, 0], sizes = [2, 4, 16], strides = [1, 1, 1]} : vector<2x8x16xf32> to vector<2x4x16xf32>
    %c0_9 = arith.constant 0 : index
    %c0_10 = arith.constant 0 : index
    %c0_11 = arith.constant 0 : index
    %20 = vector.load %arg4[%c0_9, %c0_10, %c0_11] : memref<2x4x16xf32, #tpu.memory_space<vmem>>, vector<2x4x16xf32>
    tpu.vector_store %arg4[%c0_9, %c0_10, %c0_11], %19 {strides = array<i32>} : memref<2x4x16xf32, #tpu.memory_space<vmem>>, vector<2x4x16xf32>,
    return
  }
  func.func @transform_0(%arg0: i32) -> (i32, i32, i32) {
    %c0_i32 = arith.constant 0 : i32
    %c0_i32_0 = arith.constant 0 : i32
    %c0_i32_1 = arith.constant 0 : i32
    return %arg0, %c0_i32, %c0_i32_0 : i32, i32, i32
  }
  func.func @transform_1(%arg0: i32) -> (i32, i32) {
    %c0_i32 = arith.constant 0 : i32
    %c0_i32_0 = arith.constant 0 : i32
    %c0_i32_1 = arith.constant 0 : i32
    return %c0_i32, %c0_i32_0 : i32, i32
  }
  func.func @transform_2(%arg0: i32) -> (i32, i32) {
    %c0_i32 = arith.constant 0 : i32
    %c0_i32_0 = arith.constant 0 : i32
    %c0_i32_1 = arith.constant 0 : i32
    return %c0_i32, %c0_i32_0 : i32, i32
  }
  func.func @transform_3(%arg0: i32) -> (i32, i32, i32) {
    %c0_i32 = arith.constant 0 : i32
    %c0_i32_0 = arith.constant 0 : i32
    %c0_i32_1 = arith.constant 0 : i32
    return %arg0, %c0_i32, %c0_i32_0 : i32, i32, i32
  }
}

</mosaic_0001>

<bundles_post_ra>
// kernel: tpu_custom_call.1
= control target key start
LH: loop header
LB: loop body
LE: loop exit
PB: predicated region body
PF: predicated region fallthrough
CT: control target
= control target key end

     0   :  { %8 = vsyncpa [#allocation3], 0  ;;  %s1498_s0 = inlined_call_operand.hbm [shape: f32[8,16,128], index: 0, kind: input, shape index: {}]   ;;  %s1499_s1 = inlined_call_operand.hbm [shape: f32[32,128], index: 1, kind: input, shape index: {}]   ;;  %s1500_s2 = inlined_call_operand.hbm [shape: f32[8,32], index: 2, kind: input, shape index: {}]   ;;  %s1501_s3 = inlined_call_operand.hbm [shape: f32[8,4,16], index: 3, kind: output, shape index: {}]  }
   0x1   :  { %10 = vsyncpa [#allocation3 + $0x1], 0 }
   0x2   :  { %11 = vsyncpa [#allocation6], 0 }
   0x3   :  { %12 = vsyncpa [#allocation4], 0 }
   0x4   :  { %14 = vsyncpa [#allocation4 + $0x1], 0  ;;  %s1303_s12 = smov 0   ;;  %s1305_s13 = smov 0  }
   0x5   :  { %s1307_s14 = smov 0   ;;  %s1309_s15 = smov 0  }
   0x6 LB: > { %s1324_s16 = sadd.s32 4294967295, %s1275_s15   ;;  %s1001_s17 = sadd.s32 4294967294, %s1275_s15   ;;  %s1275_s15 = sphi %s1309_s15, %s1510_s15   ;;  %s1271_s14 = sphi %s1307_s14, %s1509_s14   ;;  %s1267_s13 = sphi %s1305_s13, %s1508_s13   ;;  %s1263_s12 = sphi %s1303_s12, %s1507_s12  }
   0x7   : > { %p40_p0 = scmp.ne.s32.totalorder %s1267_s13, %s1263_s12  ;;  %p41_p1 = scmp.eq.s32.totalorder %s1324_s16, 0 }
   0x8   : > { %p106_p2 = scmp.eq.s32.totalorder %s1324_s16, 3  ;;  %p112_p3 = scmp.eq.s32.totalorder %s1001_s17, 3 }
   0x9   : > { %p1333_p4 = por %p41_p1, %p40_p0  ;;  %p1002_p5 = scmp.ge.s32.totalorder %s1275_s15, 1 }
   0xa   : > { %p1338_p6 = por %p112_p3, %p40_p0  ;;  %p119_p7 = scmp.lt.s32.totalorder %s1275_s15, 5 }
   0xb   : > { %s130_s22 = sshll.u32 %s1499_s1, 4  ;;  %s1277_s24 = smov [#allocation5]   ;;  %s131_s22 = int_to_ptr.hbm [resolvable:$true] %s130_s22 }
   0xc   : > { %p1346_p8 = pnand %p1002_p5, %p119_p7  ;;  %s132_s25 = sshll.u32 %s1277_s24, 4  ;;  %s133_s25 = int_to_ptr.vmem [resolvable:$true] %s132_s25 }
   0xd   : > { %s145_s28 = sshll.u32 %s1500_s2, 4  ;;  %s1278_s29 = smov 128   ;;  %s146_s28 = int_to_ptr.hbm [resolvable:$true] %s145_s28 }
   0xe   : > { %p1035_p9 = pneg %p1346_p8  ;;  %s1279_s30 = smov 8  }
   0xf   : > { %s1280_s4 = smov [#allocation7]   ;;  %s1361_s6 = sadd.s32 1, %s1275_s15  }
  0x10   : > { %p1036_p10 = pnand %p1035_p9, %p41_p1  ;;  %s147_s5 = sshll.u32 %s1280_s4, 4  ;;  %s148_s5 = int_to_ptr.vmem [resolvable:$true] %s147_s5 }
  0x11   : > { %s27_s7 = sadd.s32 1, %s1271_s14  ;;  %s24_s8 = ssub.s32 %s1275_s15, %s1361_s6 }
  0x12   : > { %1038 = dma.hbm_to_vmem [thread:$0]  (!%p1036_p10), %s131_s22, 512, %s133_s25, [#allocation6], %s1278_s29, %s1278_s29, %s1279_s30  }
  0x13   : > { %1041 = dma.hbm_to_vmem [thread:$0]  (!%p1036_p10), %s146_s28, 128, %s148_s5, [#allocation6]  }
  0x14   : > { %p34_p11 = scmp.ne.s32.totalorder %s1271_s14, %s1267_s13  ;;  %p25_p12 = scmp.eq.s32.totalorder %s24_s8, 0 }
  0x15   : > { %p35_p13 = scmp.eq.s32.totalorder %s1275_s15, 0  ;;  %p1052_p3 = scmp.lt.s32.totalorder %s1275_s15, 4 }
  0x16   : > { %p1371_p0 = por %p106_p2, %p34_p11  ;;  %s158_s11 = sand.u32 1, %s1271_s14  }
  0x17   : > { %s1377_s10 = scalar_select %p25_p12, %s1271_s14, %s27_s7  }
  0x18   : > { %p36_p5 = por %p35_p13, %p34_p11  ;;  %s1006_s17 = sshll.u32 %s158_s11, 5 }
  0x19   : > { %s1021_s20 = sshll.u32 %s1275_s15, 5  ;;  %s162_s25 = scalar_lea.vmem [#allocation2], %s1006_s17 }
  0x1a   : > { %s168_s24 = scalar_lea.hbm %s1498_s0, %s1021_s20  ;;  %s171_s26 = sshll.u32 %s162_s25, 4  ;;  %s172_s26 = int_to_ptr.vmem [resolvable:$true] %s171_s26 }
  0x1b   : > { %s169_s27 = sshll.u32 %s168_s24, 4  ;;  %p1384_p2 = pnand %p1052_p3, %p36_p5  ;;  %s170_s27 = int_to_ptr.hbm [resolvable:$true] %s169_s27 }
  0x1c   : > { %s159_s4 = scalar_lea.sflag [#allocation3], %s158_s11  ;;  %s1175_s5 = sshra.s32 %s170_s27, 4  ;;  %s1176_s5 = int_to_ptr.hbm [resolvable:$true] %s1175_s5 }
  0x1d   : > { %s1177_s7 = scalar_lea.hbm %s1176_s5, 32  ;;  %p1179_p9 = pneg %p1384_p2 }
  0x1e   : > { %p1178_p7 = scmp.ne.s32.totalorder %s1176_s5, %s1177_s7  ;;  %s1182_s20 = scalar_lea.hbm %s1498_s0, 128 }
  0x1f   : > { %p1183_p12 = scmp.lt.s32.totalorder %s1176_s5, %s1498_s0  ;;  %p1184_p13 = scmp.lt.s32.totalorder %s1182_s20, %s1177_s7 }
  0x20   : > { %p1180_p10 = pnand %p1179_p9, %p1178_p7 }
  0x21   : > { %p1185_p3 = por %p1184_p13, %p1183_p12 }
  0x22   : > { %p1181_p11 = pneg %p1180_p10 }
  0x24   : > { %p1186_p5 = pnand %p1185_p3, %p1181_p11 }
  0x26   : > { %1189 = shalt.err (!%p1186_p5)
}
  0x27   : > { %1045 = dma.hbm_to_vmem [thread:$0]  (!%p1384_p2), %s170_s27, 512, %s172_s26, %s159_s4, %s1278_s29, %s1278_s29, %s1279_s30  }
  0x28   : > { %183 = sbr.rel (%p1346_p8) target bundleno = 664 (0x298), region = 32  ;;  %s1404_s11 = sand.u32 (!%p1346_p8), 1, %s1267_s13  }
  0x29   : > { %s1011_s24 = sshll.u32 (!%p1346_p8), %s1404_s11, 5  ;;  %s186_s25 = scalar_lea.sflag (!%p1346_p8), [#allocation3], %s1404_s11 }
  0x2a   : > { %s1408_s5 = scalar_lea.vmem (!%p1346_p8), [#allocation2], %s1011_s24 }
  0x2d   : > { %1250 = dma.done.wait (%p1333_p4), %s186_s25, 512  }
  0x2e   : > { %1252 = vsyncadd (%p1333_p4), %s186_s25, 4294966784 }
  0x2f   : > { %1254 = dma.done.wait (%p41_p1), [#allocation6], 640  }
  0x30   : > { %1256 = vsyncadd (%p41_p1), [#allocation6], 4294966656  ;;  %v232_v0 = vld [vmem:[#allocation5 + $0x18] sm:$0xff]  ;;  %v231_v1 = vld [vmem:[#allocation5 + $0x10] sm:$0xff]  ;;  %vm516_vm0 = vcmask 261120   ;;  %vm771_vm1 = vcmask 64512  }
  0x31   : > { %v230_v2 = vld [vmem:[#allocation5 + $0x8] sm:$0xff]  ;;  %v245_v3 = vand.u32 4294901760, %v232_v0  ;;  %v1418_v4 = vand.u32 4294901760, %v231_v1  ;;  %v229_v6 = vld [vmem:[#allocation5] sm:$0xff]  ;;  %v227_v29 = vld [vmem:[%s1408_s5 + $0x10] sm:$0xff]  ;;  %s1014_s18 = sshll.u32 %s1404_s11, 3 }
  0x32   : > { %v1420_v5 = vand.u32 4294901760, %v230_v2  ;;  %v225_v7 = vld [vmem:[%s1408_s5] sm:$0xff]  ;;  %v1426_v11 = vand.u32 4294901760, %v229_v6  ;;  %v226_v13 = vld [vmem:[%s1408_s5 + $0x8] sm:$0xff]  ;;  %v269_v32 = vand.u32 4294901760, %v227_v29  ;;  %v228_v38 = vld [vmem:[%s1408_s5 + $0x18] sm:$0xff] }
  0x33   : > { %v1423_v8 = vand.u32 4294901760, %v225_v7  ;;  %246 = vmatpush.xpose.msra.mxu0 %v245_v3  ;;  %v299_v9 = vsub.f32 %v232_v0, %v245_v3  ;;  %397 = vmatpush.xpose.msra.mxu3 %v245_v3  ;;  %v305_v10 = vsub.f32 %v231_v1, %v1418_v4  ;;  %v1431_v18 = vand.u32 4294901760, %v226_v13  ;;  %v515_v48 = vld [vmem:[#allocation7] sm:$0xff]  ;;  %s222_s23 = scalar_lea.vmem [#allocation8], %s1014_s18  ;;  %s1022_s29 = sshll.u32 %s1324_s16, 3 }
  0x34   : > { %v311_v12 = vsub.f32 %v230_v2, %v1420_v5  ;;  %v317_v22 = vsub.f32 %v229_v6, %v1426_v11  ;;  %v270_v36 = vsub.f32 %v227_v29, %v269_v32  ;;  %v277_v41 = vand.u32 4294901760, %v228_v38  ;;  %s905_s27 = scalar_lea.hbm %s1501_s3, %s1022_s29  ;;  %s906_s28 = sshll.u32 %s222_s23, 4  ;;  %s907_s28 = int_to_ptr.vmem [resolvable:$true] %s906_s28 }
  0x35   : > { %v254_v14 = vsub.f32 %v225_v7, %v1423_v8  ;;  %353 = vmatpush.xpose.msra.mxu2 %v299_v9  ;;  %v300_v15 = vand.u32 4294901760, %v299_v9  ;;  %v306_v16 = vand.u32 4294901760, %v305_v10  ;;  %v262_v25 = vsub.f32 %v226_v13, %v1431_v18  ;;  %s908_s4 = sshll.u32 %s905_s27, 4  ;;  %s894_s7 = scalar_lea.sflag [#allocation4], %s1404_s11  ;;  %s909_s4 = int_to_ptr.hbm [resolvable:$true] %s908_s4 }
  0x36   : > { %v312_v21 = vand.u32 4294901760, %v311_v12  ;;  %v318_v28 = vand.u32 4294901760, %v317_v22  ;;  %v271_v40 = vand.u32 4294901760, %v270_v36  ;;  %v278_v43 = vsub.f32 %v228_v38, %v277_v41  ;;  %s1219_s8 = sshra.s32 %s909_s4, 4  ;;  %s1225_s21 = scalar_lea.hbm %s1501_s3, 32  ;;  %s1220_s8 = int_to_ptr.hbm [resolvable:$true] %s1219_s8 }
  0x37   : > { %v255_v17 = vand.u32 4294901760, %v254_v14  ;;  %248 = vmatpush.xpose.msra.mxu0 %v1418_v4  ;;  %v301_v19 = vsub.f32 %v299_v9, %v300_v15  ;;  %399 = vmatpush.xpose.msra.mxu3 %v1418_v4  ;;  %v307_v20 = vsub.f32 %v305_v10, %v306_v16  ;;  %v263_v31 = vand.u32 4294901760, %v262_v25  ;;  %s1221_s17 = scalar_lea.hbm %s1220_s8, 8  ;;  %p1226_p2 = scmp.lt.s32.totalorder %s1220_s8, %s1501_s3 }
  0x38   : > { %v313_v27 = vsub.f32 %v311_v12, %v312_v21  ;;  %v319_v34 = vsub.f32 %v317_v22, %v318_v28  ;;  %v272_v42 = vsub.f32 %v270_v36, %v271_v40  ;;  %v279_v45 = vand.u32 4294901760, %v278_v43  ;;  %p1222_p1 = scmp.ne.s32.totalorder %s1220_s8, %s1221_s17  ;;  %p1227_p7 = scmp.lt.s32.totalorder %s1225_s21, %s1221_s17 }
  0x39   : > { %v302_v23 = vand.u32 4294901760, %v301_v19  ;;  %356 = vmatpush.xpose.msra.mxu2 %v305_v10  ;;  %v256_v24 = vsub.f32 %v254_v14, %v255_v17  ;;  %v308_v26 = vand.u32 4294901760, %v307_v20  ;;  %v264_v35 = vsub.f32 %v262_v25, %v263_v31 }
  0x3a   : > { %v314_v33 = vand.u32 4294901760, %v313_v27  ;;  %v320_v37 = vand.u32 4294901760, %v319_v34  ;;  %v273_v44 = vand.u32 4294901760, %v272_v42  ;;  %v280_v46 = vsub.f32 %v278_v43, %v279_v45  ;;  %p1223_p4 = pnand %p1222_p1, %p1371_p0  ;;  %p1228_p9 = por %p1227_p7, %p1226_p2 }
  0x3b   : > { %250 = vmatpush.xpose.msra.mxu0 %v1420_v5  ;;  %303 = vmatpush.xpose.msra.mxu1 %v302_v23  ;;  %v257_v30 = vand.u32 4294901760, %v256_v24  ;;  %v265_v39 = vand.u32 4294901760, %v264_v35  ;;  %v530_v49 = vsel %vm516_vm0, %v515_v48, 0  ;;  %vm890_vm2 = vcmask 125952  }
  0x3c   : > { %401 = vmatpush.xpose.msra.mxu3 %v1420_v5  ;;  %v281_v47 = vand.u32 4294901760, %v280_v46  ;;  %v547_v50 = vand.u32 4294901760, %v530_v49  ;;  %p1224_p8 = pneg %p1223_p4 }
  0x3d   : > { %359 = vmatpush.xpose.msra.mxu2 %v311_v12 }
  0x3e   : > { %v598_v52 = vsub.f32 %v530_v49, %v547_v50  ;;  %p1229_p10 = pnand %p1228_p9, %p1224_p8 }
  0x3f   : > { %252 = vmatpush.xpose.msra.mxu0 %v1426_v11  ;;  %309 = vmatpush.xpose.msra.mxu1 %v308_v26 }
  0x40   : > { %403 = vmatpush.xpose.msra.mxu3 %v1426_v11  ;;  %v599_v53 = vand.u32 4294901760, %v598_v52 }
  0x41   : > { %362 = vmatpush.xpose.msra.mxu2 %v317_v22 }
  0x42   : > { %258 = vmatmul.f32.vlgmr.msra.gmra.mxu0 %v257_v30  ;;  %v600_v54 = vsub.f32 %v598_v52, %v599_v53 }
  0x43   : > { %444 = vmatpush.xpose.msrb.mxu0 %v300_v15  ;;  %315 = vmatpush.xpose.msra.mxu1 %v314_v33 }
  0x44   : > { %407 = vmatmul.f32.vlgmr.msra.gmra.mxu3 %v255_v17  ;;  %365 = vmatmul.f32.vlgmr.msra.gmra.mxu2 %v254_v14  ;;  %v601_v55 = vand.u32 4294901760, %v600_v54 }
  0x45   : > { %548 = vmatpush.xpose.msrb.mxu2 %v547_v50 }
  0x46   : > { %602 = vmatpush.xpose.msrb.mxu3 %v601_v55 }
  0x47   : > { %448 = vmatpush.xpose.msrb.mxu0 %v306_v16  ;;  %321 = vmatpush.xpose.msra.mxu1 %v320_v37 }
  0x49   : > { %719 = vmatpush.xpose.msra.mxu2 %v599_v53 }
  0x4a   : > { %266 = vmatmul.f32.gmra.mxu0 %v265_v39  ;;  %323 = vmatmul.f32.vlgmr.msra.gmra.mxu1 %v1423_v8 }
  0x4b   : > { %487 = vmatpush.xpose.msrb.mxu1 %v245_v3  ;;  %452 = vmatpush.xpose.msrb.mxu0 %v312_v21 }
  0x4c   : > { %413 = vmatmul.f32.gmra.mxu3 %v263_v31  ;;  %370 = vmatmul.f32.gmra.mxu2 %v262_v25 }
  0x4d   : > { %753 = vmatpush.xpose.msra.mxu3 %v547_v50 }
  0x4f   : > { %489 = vmatpush.xpose.msrb.mxu1 %v1418_v4  ;;  %456 = vmatpush.xpose.msrb.mxu0 %v318_v28 }
  0x52   : > { %274 = vmatmul.f32.gmra.mxu0 %v273_v44  ;;  %327 = vmatmul.f32.gmra.mxu1 %v1431_v18 }
  0x53   : > { %491 = vmatpush.xpose.msrb.mxu1 %v1420_v5  ;;  %637 = vmatpush.xpose.msra.mxu0 %v598_v52 }
  0x54   : > { %419 = vmatmul.f32.gmra.mxu3 %v271_v40  ;;  %375 = vmatmul.f32.gmra.mxu2 %v270_v36 }
  0x57   : > { %493 = vmatpush.xpose.msrb.mxu1 %v1426_v11 }
  0x5a   : > { %282 = vmatmul.f32.gmra.mxu0 %v281_v47  ;;  %331 = vmatmul.f32.gmra.mxu1 %v269_v32 }
  0x5b   : > { %675 = vmatpush.xpose.msra.mxu1 %v547_v50 }
  0x5c   : > { %425 = vmatmul.f32.gmra.mxu3 %v279_v45  ;;  %380 = vmatmul.f32.gmra.mxu2 %v278_v43 }
  0x62   : > { %335 = vmatmul.f32.gmra.mxu1 %v277_v41  ;;  %458 = vmatmul.f32.vlgmr.msrb.gmra.mxu0 %v1423_v8 }
  0x6a   : > { %462 = vmatmul.f32.gmra.mxu0 %v1431_v18  ;;  %495 = vmatmul.f32.vlgmr.msrb.gmra.mxu1 %v1423_v8 }
  0x72   : > { %466 = vmatmul.f32.gmra.mxu0 %v269_v32  ;;  %499 = vmatmul.f32.gmra.mxu1 %v1431_v18 }
  0x7a   : > { %470 = vmatmul.f32.gmra.mxu0 %v277_v41  ;;  %503 = vmatmul.f32.gmra.mxu1 %v269_v32 }
  0x82   : > { %507 = vmatmul.f32.gmra.mxu1 %v277_v41 }
  0xbf   : > { %v259_v51 = vpop.f32.mrf.mxu0 }
  0xc7   : > { %v267_v56 = vpop.f32.mrf.mxu0  ;;  %v324_v57 = vpop.f32.mrf.mxu1 }
  0xc8   : > { %v366_v60 = vpop.f32.mrf.mxu2  ;;  %v408_v63 = vpop.f32.mrf.mxu3  ;;  %v325_v0 = vadd.f32 %v324_v57, %v259_v51 }
  0xca   : > { %v367_v3 = vadd.f32 %v366_v60, %v325_v0 }
  0xcc   : > { %v409_v5 = vadd.f32 %v408_v63, %v367_v3 }
  0xcf   : > { %v275_v58 = vpop.f32.mrf.mxu0  ;;  %v328_v59 = vpop.f32.mrf.mxu1 }
  0xd0   : > { %v371_v4 = vpop.f32.mrf.mxu2  ;;  %v329_v6 = vadd.f32 %v328_v59, %v267_v56  ;;  %v414_v7 = vpop.f32.mrf.mxu3 }
  0xd2   : > { %v372_v11 = vadd.f32 %v371_v4, %v329_v6 }
  0xd4   : > { %v415_v14 = vadd.f32 %v414_v7, %v372_v11 }
  0xd7   : > { %v283_v61 = vpop.f32.mrf.mxu0  ;;  %v332_v62 = vpop.f32.mrf.mxu1 }
  0xd8   : > { %v376_v13 = vpop.f32.mrf.mxu2  ;;  %v333_v15 = vadd.f32 %v332_v62, %v275_v58  ;;  %v420_v17 = vpop.f32.mrf.mxu3 }
  0xda   : > { %v377_v20 = vadd.f32 %v376_v13, %v333_v15 }
  0xdc   : > { %v421_v25 = vadd.f32 %v420_v17, %v377_v20 }
  0xdf   : > { %v336_v1 = vpop.f32.mrf.mxu1  ;;  %v459_v2 = vpop.f32.mrf.mxu0 }
  0xe0   : > { %v460_v8 = vadd.f32 %v459_v2, %v409_v5  ;;  %v337_v26 = vadd.f32 %v336_v1, %v283_v61  ;;  %v381_v28 = vpop.f32.mrf.mxu2  ;;  %v426_v36 = vpop.f32.mrf.mxu3 }
  0xe2   : > { %v382_v33 = vadd.f32 %v381_v28, %v337_v26 }
  0xe4   : > { %v427_v41 = vadd.f32 %v426_v36, %v382_v33 }
  0xe7   : > { %v463_v9 = vpop.f32.mrf.mxu0  ;;  %v496_v10 = vpop.f32.mrf.mxu1 }
  0xe8   : > { %v497_v12 = vadd.f32 %v496_v10, %v460_v8  ;;  %v464_v16 = vadd.f32 %v463_v9, %v415_v14 }
  0xea   : > { %1095 = vtanh.f32 %v497_v12 }
  0xef   : > { %v500_v18 = vpop.f32.mrf.mxu1  ;;  %v467_v23 = vpop.f32.mrf.mxu0 }
  0xf0   : > { %v1096_v19 = vpop.eup %1095  ;;  %v501_v21 = vadd.f32 %v500_v18, %v464_v16  ;;  %v468_v29 = vadd.f32 %v467_v23, %v421_v25 }
  0xf1   : > { %v518_v22 = vsel %vm516_vm0, %v1096_v19, 0 }
  0xf2   : > { %1097 = vtanh.f32 %v501_v21  ;;  %v549_v24 = vand.u32 4294901760, %v518_v22 }
  0xf4   : > { %604 = vmatmul.f32.vlgmr.msrb.gmra.mxu3 %v549_v24  ;;  %v550_v27 = vsub.f32 %v518_v22, %v549_v24 }
  0xf6   : > { %640 = vmatmul.f32.vlgmr.msra.gmra.mxu0 %v550_v27  ;;  %v551_v30 = vand.u32 4294901760, %v550_v27 }
  0xf7   : > { %v504_v31 = vpop.f32.mrf.mxu1  ;;  %v471_v40 = vpop.f32.mrf.mxu0 }
  0xf8   : > { %v1098_v32 = vpop.eup %1097  ;;  %v505_v34 = vadd.f32 %v504_v31, %v468_v29  ;;  %679 = vmatmul.f32.vlgmr.msra.gmra.mxu1 %v551_v30  ;;  %v552_v35 = vsub.f32 %v550_v27, %v551_v30  ;;  %v472_v43 = vadd.f32 %v471_v40, %v427_v41 }
  0xf9   : > { %v521_v37 = vsel %vm516_vm0, %v1098_v32, 0 }
  0xfa   : > { %1099 = vtanh.f32 %v505_v34  ;;  %v553_v38 = vand.u32 4294901760, %v552_v35  ;;  %v557_v39 = vand.u32 4294901760, %v521_v37 }
  0xfc   : > { %554 = vmatmul.f32.vlgmr.msrb.gmra.mxu2 %v553_v38  ;;  %608 = vmatmul.f32.gmra.mxu3 %v557_v39  ;;  %v558_v42 = vsub.f32 %v521_v37, %v557_v39 }
  0xfe   : > { %645 = vmatmul.f32.gmra.mxu0 %v558_v42  ;;  %v559_v44 = vand.u32 4294901760, %v558_v42 }
  0xff   : > { %v508_v45 = vpop.f32.mrf.mxu1 }
 0x100   : > { %v1100_v46 = vpop.eup %1099  ;;  %v509_v47 = vadd.f32 %v508_v45, %v472_v43  ;;  %685 = vmatmul.f32.gmra.mxu1 %v559_v44  ;;  %v560_v48 = vsub.f32 %v558_v42, %v559_v44 }
 0x101   : > { %v524_v49 = vsel %vm516_vm0, %v1100_v46, 0 }
 0x102   : > { %1101 = vtanh.f32 %v509_v47  ;;  %v561_v50 = vand.u32 4294901760, %v560_v48  ;;  %v565_v51 = vand.u32 4294901760, %v524_v49 }
 0x104   : > { %562 = vmatmul.f32.gmra.mxu2 %v561_v50  ;;  %612 = vmatmul.f32.gmra.mxu3 %v565_v51  ;;  %v566_v52 = vsub.f32 %v524_v49, %v565_v51 }
 0x106   : > { %650 = vmatmul.f32.gmra.mxu0 %v566_v52  ;;  %v567_v53 = vand.u32 4294901760, %v566_v52 }
 0x108   : > { %v1102_v54 = vpop.eup %1101  ;;  %691 = vmatmul.f32.gmra.mxu1 %v567_v53  ;;  %v568_v55 = vsub.f32 %v566_v52, %v567_v53 }
 0x109   : > { %v527_v56 = vsel %vm516_vm0, %v1102_v54, 0 }
 0x10a   : > { %v569_v57 = vand.u32 4294901760, %v568_v55  ;;  %v573_v58 = vand.u32 4294901760, %v527_v56 }
 0x10c   : > { %570 = vmatmul.f32.gmra.mxu2 %v569_v57  ;;  %616 = vmatmul.f32.gmra.mxu3 %v573_v58  ;;  %v574_v59 = vsub.f32 %v527_v56, %v573_v58 }
 0x10e   : > { %655 = vmatmul.f32.gmra.mxu0 %v574_v59  ;;  %v575_v60 = vand.u32 4294901760, %v574_v59 }
 0x110   : > { %697 = vmatmul.f32.gmra.mxu1 %v575_v60  ;;  %v576_v61 = vsub.f32 %v574_v59, %v575_v60 }
 0x112   : > { %v577_v62 = vand.u32 4294901760, %v576_v61 }
 0x114   : > { %578 = vmatmul.f32.gmra.mxu2 %v577_v62  ;;  %755 = vmatmul.f32.vlgmr.msra.gmra.mxu3 %v549_v24 }
 0x11c   : > { %721 = vmatmul.f32.vlgmr.msra.gmra.mxu2 %v549_v24  ;;  %759 = vmatmul.f32.gmra.mxu3 %v557_v39 }
 0x124   : > { %725 = vmatmul.f32.gmra.mxu2 %v557_v39  ;;  %763 = vmatmul.f32.gmra.mxu3 %v565_v51 }
 0x12c   : > { %729 = vmatmul.f32.gmra.mxu2 %v565_v51  ;;  %767 = vmatmul.f32.gmra.mxu3 %v573_v58 }
 0x134   : > { %733 = vmatmul.f32.gmra.mxu2 %v573_v58 }
 0x173   : > { %v641_v6 = vpop.f32.mrf.mxu0 }
 0x175   : > { %v680_v7 = vpop.f32.mrf.mxu1 }
 0x177   : > { %v605_v63 = vpop.f32.mrf.mxu3 }
 0x17b   : > { %v646_v11 = vpop.f32.mrf.mxu0 }
 0x17d   : > { %v686_v15 = vpop.f32.mrf.mxu1 }
 0x17f   : > { %v555_v0 = vpop.f32.mrf.mxu2  ;;  %v609_v1 = vpop.f32.mrf.mxu3 }
 0x180   : > { %v606_v9 = vadd.f32 %v605_v63, %v555_v0 }
 0x182   : > { %v642_v12 = vadd.f32 %v641_v6, %v606_v9 }
 0x183   : > { %v651_v21 = vpop.f32.mrf.mxu0 }
 0x184   : > { %v681_v17 = vadd.f32 %v680_v7, %v642_v12 }
 0x185   : > { %v692_v27 = vpop.f32.mrf.mxu1 }
 0x187   : > { %v563_v2 = vpop.f32.mrf.mxu2  ;;  %v613_v3 = vpop.f32.mrf.mxu3 }
 0x188   : > { %v610_v13 = vadd.f32 %v609_v1, %v563_v2 }
 0x18a   : > { %v647_v16 = vadd.f32 %v646_v11, %v610_v13 }
 0x18b   : > { %v656_v36 = vpop.f32.mrf.mxu0 }
 0x18c   : > { %v687_v20 = vadd.f32 %v686_v15, %v647_v16 }
 0x18d   : > { %v698_v42 = vpop.f32.mrf.mxu1 }
 0x18f   : > { %v571_v4 = vpop.f32.mrf.mxu2  ;;  %v617_v5 = vpop.f32.mrf.mxu3 }
 0x190   : > { %v614_v25 = vadd.f32 %v613_v3, %v571_v4 }
 0x192   : > { %v652_v31 = vadd.f32 %v651_v21, %v614_v25 }
 0x194   : > { %v693_v39 = vadd.f32 %v692_v27, %v652_v31 }
 0x197   : > { %v579_v8 = vpop.f32.mrf.mxu2  ;;  %v756_v10 = vpop.f32.mrf.mxu3 }
 0x198   : > { %v618_v32 = vadd.f32 %v617_v5, %v579_v8 }
 0x19a   : > { %v657_v38 = vadd.f32 %v656_v36, %v618_v32 }
 0x19c   : > { %v699_v44 = vadd.f32 %v698_v42, %v657_v38 }
 0x19f   : > { %v722_v14 = vpop.f32.mrf.mxu2  ;;  %v760_v19 = vpop.f32.mrf.mxu3 }
 0x1a0   : > { %v723_v18 = vadd.f32 %v722_v14, %v681_v17 }
 0x1a2   : > { %v757_v23 = vadd.f32 %v756_v10, %v723_v18 }
 0x1a4   : > { %v772_v28 = vsel %vm771_vm1, %v757_v23, -inf }
 0x1a7   : > { %v726_v22 = vpop.f32.mrf.mxu2  ;;  %v764_v34 = vpop.f32.mrf.mxu3 }
 0x1a8   : > { %v727_v24 = vadd.f32 %v726_v22, %v687_v20 }
 0x1aa   : > { %v761_v26 = vadd.f32 %v760_v19, %v727_v24 }
 0x1ac   : > { %v773_v29 = vsel %vm771_vm1, %v761_v26, -inf }
 0x1ad   : > { %v774_v30 = vmax.f32 %v772_v28, %v773_v29 }
 0x1af   : > { %v775_v33 = vrot.slane %v774_v30, 4  ;;  %v730_v35 = vpop.f32.mrf.mxu2  ;;  %v768_v50 = vpop.f32.mrf.mxu3 }
 0x1b0   : > { %v731_v41 = vadd.f32 %v730_v35, %v693_v39 }
 0x1b1   : > { %v776_v37 = vmax.f32 %v774_v30, %v775_v33 }
 0x1b2   : > { %v765_v47 = vadd.f32 %v764_v34, %v731_v41 }
 0x1b3   : > { %v777_v40 = vrot.slane %v776_v37, 2 }
 0x1b4   : > { %v781_v54 = vsel %vm771_vm1, %v765_v47, -inf }
 0x1b5   : > { %v778_v43 = vmax.f32 %v776_v37, %v777_v40 }
 0x1b7   : > { %v779_v45 = vrot.slane %v778_v43, 1  ;;  %v734_v46 = vpop.f32.mrf.mxu2 }
 0x1b8   : > { %v735_v48 = vadd.f32 %v734_v46, %v699_v44 }
 0x1b9   : > { %v780_v49 = vmax.f32 %v778_v43, %v779_v45 }
 0x1ba   : > { %v769_v51 = vadd.f32 %v768_v50, %v735_v48 }
 0x1bb   : > { %v791_v52 = vsub.f32 %v761_v26, %v780_v49  ;;  %v790_v53 = vsub.f32 %v757_v23, %v780_v49 }
 0x1bc   : > { %v782_v55 = vsel %vm771_vm1, %v769_v51, -inf }
 0x1bd   : > { %v796_v56 = vmul.f32 1.442695, %v791_v52  ;;  %v783_v57 = vmax.f32 %v781_v54, %v782_v55  ;;  %v794_v58 = vmul.f32 1.442695, %v790_v53 }
 0x1bf   : > { %1103 = vpow2.f32 %v796_v56  ;;  %v784_v59 = vrot.slane %v783_v57, 4 }
 0x1c0   : > { %1105 = vpow2.f32 %v794_v58 }
 0x1c1   : > { %v785_v60 = vmax.f32 %v783_v57, %v784_v59 }
 0x1c3   : > { %v786_v61 = vrot.slane %v785_v60, 2 }
 0x1c5   : > { %v1104_v62 = vpop.eup %1103  ;;  %v787_v63 = vmax.f32 %v785_v60, %v786_v61 }
 0x1c6   : > { %v1106_v0 = vpop.eup %1105  ;;  %v803_v1 = vsel %vm771_vm1, %v1104_v62, 0.0 }
 0x1c7   : > { %v788_v2 = vrot.slane %v787_v63, 1  ;;  %v802_v3 = vsel %vm771_vm1, %v1106_v0, 0.0 }
 0x1c8   : > { %v804_v4 = vadd.f32 %v803_v1, %v802_v3 }
 0x1c9   : > { %v789_v5 = vmax.f32 %v787_v63, %v788_v2 }
 0x1ca   : > { %v805_v6 = vrot.slane %v804_v4, 4 }
 0x1cb   : > { %v793_v7 = vsub.f32 %v769_v51, %v789_v5  ;;  %v792_v8 = vsub.f32 %v765_v47, %v789_v5 }
 0x1cc   : > { %v806_v9 = vadd.f32 %v805_v6, %v804_v4 }
 0x1cd   : > { %v800_v10 = vmul.f32 1.442695, %v793_v7  ;;  %v798_v11 = vmul.f32 1.442695, %v792_v8 }
 0x1ce   : > { %v807_v12 = vrot.slane %v806_v9, 2 }
 0x1cf   : > { %1107 = vpow2.f32 %v800_v10 }
 0x1d0   : > { %v808_v13 = vadd.f32 %v807_v12, %v806_v9  ;;  %1109 = vpow2.f32 %v798_v11 }
 0x1d2   : > { %v809_v14 = vrot.slane %v808_v13, 1 }
 0x1d4   : > { %v810_v15 = vadd.f32 %v809_v14, %v808_v13 }
 0x1d5   : > { %v1108_v16 = vpop.eup %1107 }
 0x1d6   : > { %v1110_v17 = vpop.eup %1109  ;;  %v812_v18 = vsel %vm771_vm1, %v1108_v16, 0.0  ;;  %1111 = vrcp.f32 %v810_v15 }
 0x1d7   : > { %v811_v19 = vsel %vm771_vm1, %v1110_v17, 0.0 }
 0x1d8   : > { %v813_v20 = vadd.f32 %v812_v18, %v811_v19 }
 0x1da   : > { %v814_v21 = vrot.slane %v813_v20, 4 }
 0x1dc   : > { %v1112_v22 = vpop.eup %1111  ;;  %v815_v23 = vadd.f32 %v814_v21, %v813_v20 }
 0x1dd   : > { %v822_v24 = vmul.f32 %v1112_v22, %v1106_v0  ;;  %v823_v29 = vmul.f32 %v1112_v22, %v1104_v62 }
 0x1de   : > { %v816_v25 = vrot.slane %v815_v23, 2 }
 0x1df   : > { %826 = vxpose.xlu0.b32.start [1/2] (short) (narrow) %v822_v24, 8 }
 0x1e0   : > { %v817_v26 = vadd.f32 %v816_v25, %v815_v23 }
 0x1e2   : > { %v818_v27 = vrot.slane %v817_v26, 1 }
 0x1e4   : > { %v819_v28 = vadd.f32 %v818_v27, %v817_v26 }
 0x1e6   : > { %1113 = vrcp.f32 %v819_v28 }
 0x1e7   : > { %827 = vxpose.xlu0.b32.end [2/2] (short) (narrow) %v823_v29, 8 }
 0x1ec   : > { %v1114_v30 = vpop.eup %1113 }
 0x1ed   : > { %v824_v31 = vmul.f32 %v1114_v30, %v1110_v17  ;;  %v825_v32 = vmul.f32 %v1114_v30, %v1108_v16 }
 0x1ef   : > { %858 = vxpose.xlu1.b32.start [1/2] (short) (narrow) %v824_v31, 8 }
 0x1f7   : > { %859 = vxpose.xlu1.b32.end [2/2] (short) (narrow) %v825_v32, 8 }
 0x283   : > { %v842_v33 = vpop.trf.xlu0 }
 0x284   : > { %891 = vst.msk [vmem:[%s222_s23] sm:$0xf] %vm890_vm2, %v842_v33 }
 0x293   : > { %v874_v34 = vpop.trf.xlu1 }
 0x294   : > { %892 = vst.msk [vmem:[%s222_s23 + $0x4] sm:$0xf] %vm890_vm2, %v874_v34 }
 0x295   : > { %1232 = shalt.err (!%p1229_p10)
}
 0x296   : > { %s1281_s11 = smov 64   ;;  %s1282_s25 = smov 4  }
 0x297   : > { %1033 = dma.vmem_to_hbm [thread:$0]  (%p1371_p0), %s907_s28, 128, %s909_s4, %s894_s7, %s1281_s11, %s1281_s11, %s1282_s25  }
 0x298 PF: > { %p1055_p11 = scmp.ge.s32.totalorder %s1275_s15, 2  ;;  %s923_s5 = sand.u32 1, %s1263_s12  }
 0x299   : > { %s924_s18 = scalar_lea.sflag [#allocation4], %s923_s5 }
 0x29a   : > { %p1047_p12 = pnand %p1055_p11, %p1338_p6 }
 0x29c   : > { %p1048_p13 = pneg %p1047_p12 }
 0x29e   : > { %1258 = dma.done.wait (%p1048_p13), %s924_s18, 128  }
 0x29f   : > { %1260 = vsyncadd (%p1048_p13), %s924_s18, 4294967168  ;;  %p17_p3 = scmp.ge.s32.totalorder %s1361_s6, 6   ;;  %s1507_s12 = smov %s1267_s13 }
 0x2a0   : > { %s1508_s13 = smov %s1271_s14  ;;  %s1509_s14 = smov %s1377_s10 }
 0x2a1   : > { %s1510_s15 = smov %s1361_s6  ;;  %19 = sbr.rel (!%p17_p3) target bundleno = 6 (0x6), region = 85 }
 0x2a6   :  { %930 = vsyncpa [#allocation3], 1 }
 0x2a7   :  { %932 = vsyncpa [#allocation3 + $0x1], 1 }
 0x2a8   :  { %933 = vsyncpa [#allocation6], 1 }
 0x2a9   :  { %934 = vsyncpa [#allocation4], 1 }
 0x2aa   :  { %936 = vsyncpa [#allocation4 + $0x1], 1 }

</bundles_post_ra>
